<compile_context>
chip_gen: v5e
topology: v5e:2x2
jax: 0.10.0
libtpu: 0.0.40
codegen_flags: <defaults>
</compile_context>

<pallas_src>
import jax
import jax.numpy as jnp
from jax.experimental import pallas as pl
from jax.experimental.pallas import tpu as pltpu


def _concat_attention_kernel(s_ref, h_ref, w1s_ref, w1h_ref, b1_ref, w2_ref,
                             b2_ref, out_ref):
    # s_ref / h_ref : (TB*T, H) row-block of the flattened activations
    # w1s / w1h     : (H, H)   halves of linear.weight.T (resident)
    # b1            : (1, H)   linear.bias
    # w2            : (1, H)   att_linear.weight
    # b2            : (1, 1)   att_linear.bias (SMEM scalar)
    # out_ref       : (TB, T)  softmax over T per batch row
    TB, T = out_ref.shape
    H = s_ref.shape[-1]

    # [s ; h] @ W1^T + b1  (concat split into two MXU matmuls, f32 accumulate)
    z = (jnp.dot(s_ref[...], w1s_ref[...], preferred_element_type=jnp.float32)
         + jnp.dot(h_ref[...], w1h_ref[...], preferred_element_type=jnp.float32)
         + b1_ref[...])                                   # (TB*T, H) f32

    t = jnp.tanh(z)                                        # EUP, f32

    # att_linear: one score per (b, t).  Leading-dim split only (H untouched),
    # layout-preserving when T % 8 == 0.
    w2_row = w2_ref[...].astype(jnp.float32).reshape(1, 1, H)
    score = jnp.sum(t.reshape(TB, T, H) * w2_row, axis=-1) + b2_ref[0, 0]  # (TB, T)

    # exp(log_softmax(score)) == softmax over T; T is fully inside this block.
    m = jnp.max(score, axis=1, keepdims=True)
    e = jnp.exp(score - m)
    out_ref[...] = e / jnp.sum(e, axis=1, keepdims=True)


def concat_attention(s, h, w1, b1, w2, b2, *, batch_block=None,
                     compute_dtype=None):
    """s, h: (B, T, H) f32.  w1: (2H, H) (= torch linear.weight.T), b1: (H,),
    w2: (1, H) (= torch att_linear.weight), b2: scalar.
    compute_dtype: optional dtype (e.g. jnp.bfloat16) for the matmul inputs."""
    B, T, H = s.shape

    # Flatten in XLA (layout plumbing, not kernel work).
    s2 = s.reshape(B * T, H)
    h2 = h.reshape(B * T, H)
    w1s = w1[:H, :]                      # multiplies s
    w1h = w1[H:, :]                      # multiplies h
    if compute_dtype is not None:
        s2 = s2.astype(compute_dtype)
        h2 = h2.astype(compute_dtype)
        w1s = w1s.astype(compute_dtype)
        w1h = w1h.astype(compute_dtype)
    b1_2d = b1.reshape(1, H).astype(jnp.float32)
    w2_2d = w2.reshape(1, H).astype(jnp.float32)
    b2_2d = jnp.asarray(b2, jnp.float32).reshape(1, 1)

    # --- pick the batch tile ------------------------------------------------
    if batch_block is None:
        itemsize = jnp.dtype(s2.dtype).itemsize
        # per row: s,h blocks double-buffered (~4*itemsize*H) + f32 z/t (~8*H)
        per_row = H * (4 * itemsize + 8)
        budget = 8 * 1024 * 1024                      # activation budget / stage
        rows = max(T, budget // max(per_row, 1))
        batch_block = max(1, min(B, rows // T))

    # Legality: block must evenly divide B; a strict sub-block needs its leading
    # (sublane) extents to be multiples of 8.
    def _legal(bb):
        return (B % bb == 0) and (bb == B or bb % 8 == 0)

    while batch_block > 1 and not _legal(batch_block):
        batch_block -= 1
    if not _legal(batch_block):
        batch_block = B

    rb = batch_block * T                               # rows per block
    grid = (B // batch_block,)

    in_specs = [
        pl.BlockSpec((rb, H), lambda i: (i, 0)),       # s rows (pipelined)
        pl.BlockSpec((rb, H), lambda i: (i, 0)),       # h rows (pipelined)
        pl.BlockSpec((H, H), lambda i: (0, 0)),        # w1s (resident)
        pl.BlockSpec((H, H), lambda i: (0, 0)),        # w1h (resident)
        pl.BlockSpec((1, H), lambda i: (0, 0)),        # b1
        pl.BlockSpec((1, H), lambda i: (0, 0)),        # w2
        pl.BlockSpec(memory_space=pltpu.MemorySpace.SMEM),  # b2 scalar
    ]
    out_specs = pl.BlockSpec((batch_block, T), lambda i: (i, 0))

    itemsize = jnp.dtype(s2.dtype).itemsize
    cost = pl.CostEstimate(
        flops=2 * B * T * (2 * H) * H + 2 * B * T * H,
        transcendentals=B * T * H + B * T,
        bytes_accessed=(2 * B * T * H) * itemsize + (2 * H * H) * itemsize
                       + 2 * H * 4 + B * T * 4,
    )

    return pl.pallas_call(
        _concat_attention_kernel,
        out_shape=jax.ShapeDtypeStruct((B, T), jnp.float32),
        grid=grid,
        in_specs=in_specs,
        out_specs=out_specs,
        compiler_params=pltpu.CompilerParams(
            dimension_semantics=("parallel",),
            vmem_limit_bytes=32 * 1024 * 1024,
        ),
        cost_estimate=cost,
    )(s2, h2, w1s, w1h, b1_2d, w2_2d, b2_2d)


def reference(s, h, w1, b1, w2, b2):
    B, T, H = s.shape
    x = jnp.concatenate([s.reshape(B * T, H), h.reshape(B * T, H)], axis=1)
    z = jnp.tanh(x @ w1 + b1)
    score = (z @ w2.T + b2).reshape(B, T)
    return jax.nn.softmax(score, axis=1)


if __name__ == "__main__":
    B, T, H = 2, 8, 32  # batch, seq, hidden_size

    key = jax.random.PRNGKey(0)
    k_s, k_h, k_w1, k_w2 = jax.random.split(key, 4)

    s = jax.random.normal(k_s, (B, T, H), dtype=jnp.float32)
    h = jax.random.normal(k_h, (B, T, H), dtype=jnp.float32)

    # deterministic init matching the module: uniform(-0.1, 0.1) weights, zero bias
    w1 = jax.random.uniform(k_w1, (2 * H, H), jnp.float32, -0.1, 0.1)  # linear.weight.T
    b1 = jnp.zeros((H,), jnp.float32)
    w2 = jax.random.uniform(k_w2, (1, H), jnp.float32, -0.1, 0.1)      # att_linear.weight
    b2 = jnp.float32(0.0)

    ref = reference(s, h, w1, b1, w2, b2)

    # f32 path (tight tolerance)
    out = jax.block_until_ready(concat_attention(s, h, w1, b1, w2, b2))
    assert out.shape == (B, T)
    assert jnp.allclose(out, ref, atol=1e-5, rtol=1e-5), (out, ref)
    assert jnp.allclose(jnp.sum(out, axis=1), 1.0, atol=1e-5)

    # bf16 matmul-input path (v6e/v7x bandwidth optimization); tanh/softmax f32
    out_bf16 = jax.block_until_ready(
        concat_attention(s, h, w1, b1, w2, b2, compute_dtype=jnp.bfloat16))
    assert jnp.allclose(out_bf16, ref, atol=2e-2, rtol=2e-2)
    assert jnp.allclose(jnp.sum(out_bf16, axis=1), 1.0, atol=1e-3)

    print("KERNEL_OK")
</pallas_src>

<mosaic_0001>
module attributes {stable_mosaic.version = 11 : i64} {
  func.func @_concat_attention_kernel(%arg0: i32, %arg1: memref<16x32xf32, #tpu.memory_space<vmem>>, %arg2: memref<16x32xf32, #tpu.memory_space<vmem>>, %arg3: memref<32x32xf32, #tpu.memory_space<vmem>>, %arg4: memref<32x32xf32, #tpu.memory_space<vmem>>, %arg5: memref<1x32xf32, #tpu.memory_space<vmem>>, %arg6: memref<1x32xf32, #tpu.memory_space<vmem>>, %arg7: memref<1x1xf32, #tpu.memory_space<smem>>, %arg8: memref<2x8xf32, #tpu.memory_space<vmem>>) attributes {dimension_semantics = [#tpu.dimension_semantics<parallel>], iteration_bounds = array<i64: 1>, scalar_prefetch = 0 : i64, scratch_operands = 0 : i64, tpu.core_type = #tpu.core_type<tc>, window_params = [{transform_indices = @transform_0, window_bounds = array<i64: 16, 32>}, {transform_indices = @transform_1, window_bounds = array<i64: 16, 32>}, {pipeline_mode = #tpu.pipeline_mode<synchronous>, transform_indices = @transform_2, window_bounds = array<i64: 32, 32>}, {pipeline_mode = #tpu.pipeline_mode<synchronous>, transform_indices = @transform_3, window_bounds = array<i64: 32, 32>}, {pipeline_mode = #tpu.pipeline_mode<synchronous>, transform_indices = @transform_4, window_bounds = array<i64: 1, 32>}, {pipeline_mode = #tpu.pipeline_mode<synchronous>, transform_indices = @transform_5, window_bounds = array<i64: 1, 32>}, {transform_indices = @transform_6, window_bounds = array<i64: 1, 1>}, {transform_indices = @transform_7, window_bounds = array<i64: 2, 8>}]} {
    %c0 = arith.constant 0 : index
    %c0_0 = arith.constant 0 : index
    %0 = vector.load %arg1[%c0, %c0_0] : memref<16x32xf32, #tpu.memory_space<vmem>>, vector<16x32xf32>
    %c0_1 = arith.constant 0 : index
    %c0_2 = arith.constant 0 : index
    %1 = vector.load %arg3[%c0_1, %c0_2] : memref<32x32xf32, #tpu.memory_space<vmem>>, vector<32x32xf32>
    %cst = arith.constant dense<0.000000e+00> : vector<16x32xf32>
    %2 = tpu.matmul %0, %1, %cst {dimension_numbers = #tpu.dot_dimension_numbers<[1], [0], [0], [1], [0, 0, 1, 1], [], []>} : vector<16x32xf32>, vector<32x32xf32>, vector<16x32xf32> -> vector<16x32xf32>
    %c0_3 = arith.constant 0 : index
    %c0_4 = arith.constant 0 : index
    %3 = vector.load %arg2[%c0_3, %c0_4] : memref<16x32xf32, #tpu.memory_space<vmem>>, vector<16x32xf32>
    %c0_5 = arith.constant 0 : index
    %c0_6 = arith.constant 0 : index
    %4 = vector.load %arg4[%c0_5, %c0_6] : memref<32x32xf32, #tpu.memory_space<vmem>>, vector<32x32xf32>
    %cst_7 = arith.constant dense<0.000000e+00> : vector<16x32xf32>
    %5 = tpu.matmul %3, %4, %cst_7 {dimension_numbers = #tpu.dot_dimension_numbers<[1], [0], [0], [1], [0, 0, 1, 1], [], []>} : vector<16x32xf32>, vector<32x32xf32>, vector<16x32xf32> -> vector<16x32xf32>
    %6 = arith.addf %2, %5 : vector<16x32xf32>
    %c0_8 = arith.constant 0 : index
    %c0_9 = arith.constant 0 : index
    %7 = vector.load %arg5[%c0_8, %c0_9] : memref<1x32xf32, #tpu.memory_space<vmem>>, vector<1x32xf32>
    %8 = vector.broadcast %7 : vector<1x32xf32> to vector<16x32xf32>
    %9 = arith.addf %6, %8 : vector<16x32xf32>
    %10 = math.tanh %9 : vector<16x32xf32>
    %c0_10 = arith.constant 0 : index
    %c0_11 = arith.constant 0 : index
    %11 = vector.load %arg6[%c0_10, %c0_11] : memref<1x32xf32, #tpu.memory_space<vmem>>, vector<1x32xf32>
    %12 = vector.shape_cast %11 : vector<1x32xf32> to vector<1x1x32xf32>
    %13 = vector.shape_cast %10 : vector<16x32xf32> to vector<2x8x32xf32>
    %14 = vector.broadcast %12 : vector<1x1x32xf32> to vector<2x8x32xf32>
    %15 = arith.mulf %13, %14 : vector<2x8x32xf32>
    %cst_12 = arith.constant dense<0.000000e+00> : vector<2x8xf32>
    %16 = vector.multi_reduction <add>, %15, %cst_12 [2] : vector<2x8x32xf32> to vector<2x8xf32>
    %c0_13 = arith.constant 0 : index
    %c0_14 = arith.constant 0 : index
    %17 = memref.load %arg7[%c0_13, %c0_14] : memref<1x1xf32, #tpu.memory_space<smem>>
    %18 = vector.broadcast %17 : f32 to vector<2x8xf32>
    %19 = arith.addf %16, %18 : vector<2x8xf32>
    %cst_15 = arith.constant dense<0xFF800000> : vector<2xf32>
    %20 = vector.multi_reduction <maximumf>, %19, %cst_15 [1] : vector<2x8xf32> to vector<2xf32>
    %21 = vector.shape_cast %20 : vector<2xf32> to vector<2x1xf32>
    %22 = vector.broadcast %21 : vector<2x1xf32> to vector<2x8xf32>
    %23 = arith.subf %19, %22 : vector<2x8xf32>
    %24 = math.exp %23 : vector<2x8xf32>
    %cst_16 = arith.constant dense<0.000000e+00> : vector<2xf32>
    %25 = vector.multi_reduction <add>, %24, %cst_16 [1] : vector<2x8xf32> to vector<2xf32>
    %26 = vector.shape_cast %25 : vector<2xf32> to vector<2x1xf32>
    %27 = vector.broadcast %26 : vector<2x1xf32> to vector<2x8xf32>
    %28 = arith.divf %24, %27 : vector<2x8xf32>
    %c0_17 = arith.constant 0 : index
    %c0_18 = arith.constant 0 : index
    %29 = vector.load %arg8[%c0_17, %c0_18] : memref<2x8xf32, #tpu.memory_space<vmem>>, vector<2x8xf32>
    tpu.vector_store %arg8[%c0_17, %c0_18], %28 {strides = array<i32>} : memref<2x8xf32, #tpu.memory_space<vmem>>, vector<2x8xf32>,
    return
  }
  func.func @transform_0(%arg0: i32) -> (i32, i32) {
    %c0_i32 = arith.constant 0 : i32
    %c0_i32_0 = arith.constant 0 : i32
    return %arg0, %c0_i32 : i32, i32
  }
  func.func @transform_1(%arg0: i32) -> (i32, i32) {
    %c0_i32 = arith.constant 0 : i32
    %c0_i32_0 = arith.constant 0 : i32
    return %arg0, %c0_i32 : i32, i32
  }
  func.func @transform_2(%arg0: i32) -> (i32, i32) {
    %c0_i32 = arith.constant 0 : i32
    %c0_i32_0 = arith.constant 0 : i32
    %c0_i32_1 = arith.constant 0 : i32
    return %c0_i32, %c0_i32_0 : i32, i32
  }
  func.func @transform_3(%arg0: i32) -> (i32, i32) {
    %c0_i32 = arith.constant 0 : i32
    %c0_i32_0 = arith.constant 0 : i32
    %c0_i32_1 = arith.constant 0 : i32
    return %c0_i32, %c0_i32_0 : i32, i32
  }
  func.func @transform_4(%arg0: i32) -> (i32, i32) {
    %c0_i32 = arith.constant 0 : i32
    %c0_i32_0 = arith.constant 0 : i32
    %c0_i32_1 = arith.constant 0 : i32
    return %c0_i32, %c0_i32_0 : i32, i32
  }
  func.func @transform_5(%arg0: i32) -> (i32, i32) {
    %c0_i32 = arith.constant 0 : i32
    %c0_i32_0 = arith.constant 0 : i32
    %c0_i32_1 = arith.constant 0 : i32
    return %c0_i32, %c0_i32_0 : i32, i32
  }
  func.func @transform_6(%arg0: i32) -> (i32, i32) {
    %c0_i32 = arith.constant 0 : i32
    %c0_i32_0 = arith.constant 0 : i32
    %c0_i32_1 = arith.constant 0 : i32
    return %c0_i32, %c0_i32_0 : i32, i32
  }
  func.func @transform_7(%arg0: i32) -> (i32, i32) {
    %c0_i32 = arith.constant 0 : i32
    %c0_i32_0 = arith.constant 0 : i32
    return %arg0, %c0_i32 : i32, i32
  }
}

</mosaic_0001>

<bundles_post_ra>
// kernel: tpu_custom_call.1
= control target key start
LH: loop header
LB: loop body
LE: loop exit
PB: predicated region body
PF: predicated region fallthrough
CT: control target
= control target key end

     0   :  { %13 = vsyncpa [#allocation4], 0  ;;  %s549_s0 = inlined_call_operand.hbm [shape: f32[16,32], index: 0, kind: input, shape index: {}]   ;;  %s550_s1 = inlined_call_operand.hbm [shape: f32[16,32], index: 1, kind: input, shape index: {}]   ;;  %s551_s2 = inlined_call_operand.hbm [shape: f32[32,32], index: 2, kind: input, shape index: {}]   ;;  %s552_s3 = inlined_call_operand.hbm [shape: f32[32,32], index: 3, kind: input, shape index: {}]   ;;  %s553_s4 = inlined_call_operand.vmem [shape: f32[1,32], index: 4, kind: input, shape index: {}]   ;;  %s554_s5 = inlined_call_operand.vmem [shape: f32[1,32], index: 5, kind: input, shape index: {}]   ;;  %s555_s6 = inlined_call_operand.<no memory space> [shape: f32[1,1], index: 6, kind: input, shape index: {}]   ;;  %s556_s7 = inlined_call_operand.hbm [shape: f32[2,8], index: 7, kind: output, shape index: {}]  }
   0x1   :  { %14 = vsyncpa [#allocation7], 0 }
   0x2   :  { %15 = vsyncpa [#allocation10], 0 }
   0x3   :  { %16 = vsyncpa [#allocation5], 0  ;;  %s34_s26 = sshll.u32 %s550_s1, 4  ;;  %s457_s27 = smov [#allocation6]   ;;  %s35_s26 = int_to_ptr.hbm [resolvable:$true] %s34_s26 }
   0x4   :  { %s36_s28 = sshll.u32 %s457_s27, 4  ;;  %s21_s8 = sshll.u32 %s549_s0, 4  ;;  %s37_s28 = int_to_ptr.vmem [resolvable:$true] %s36_s28  ;;  %s22_s8 = int_to_ptr.hbm [resolvable:$true] %s21_s8 }
   0x5   :  { %s458_s9 = smov 128   ;;  %s459_s10 = smov 8  }
   0x6   :  { %42 = dma.hbm_to_vmem [thread:$0]  %s35_s26, 256, %s37_s28, [#allocation7], %s458_s9, %s458_s9, %s459_s10  }
   0x7   :  { %s460_s11 = smov [#allocation3]   ;;  %s47_s15 = sshll.u32 %s551_s2, 4  ;;  %s48_s15 = int_to_ptr.hbm [resolvable:$true] %s47_s15 }
   0x8   :  { %s23_s12 = sshll.u32 %s460_s11, 4  ;;  %s60_s17 = sshll.u32 %s552_s3, 4  ;;  %s24_s12 = int_to_ptr.vmem [resolvable:$true] %s23_s12  ;;  %s61_s17 = int_to_ptr.hbm [resolvable:$true] %s60_s17 }
   0x9   :  { %29 = dma.hbm_to_vmem [thread:$0]  %s22_s8, 256, %s24_s12, [#allocation4], %s458_s9, %s458_s9, %s459_s10  }
   0xa   :  { %s461_s18 = smov [#allocation8]   ;;  %s462_s0 = smov [#allocation9]  }
   0xb   :  { %s49_s19 = sshll.u32 %s461_s18, 4  ;;  %s62_s20 = sshll.u32 %s462_s0, 4  ;;  %s50_s19 = int_to_ptr.vmem [resolvable:$true] %s49_s19  ;;  %s63_s20 = int_to_ptr.vmem [resolvable:$true] %s62_s20 }
   0xc   :  { %55 = dma.hbm_to_vmem [thread:$0]  %s48_s15, 512, %s50_s19, [#allocation7], %s458_s9, %s458_s9, %s459_s10  }
   0xd   :  { %68 = dma.hbm_to_vmem [thread:$0]  %s61_s17, 512, %s63_s20, [#allocation10], %s458_s9, %s458_s9, %s459_s10  }
   0xe   :  { %449 = dma.done.wait [#allocation4], 256  }
   0xf   :  { %450 = vsyncadd [#allocation4], 4294967040 }
  0x10   :  { %451 = dma.done.wait [#allocation7], 768  }
  0x11   :  { %452 = vsyncadd [#allocation7], 4294966528 }
  0x12   :  { %453 = dma.done.wait [#allocation10], 512  }
  0x13   :  { %454 = vsyncadd [#allocation10], 4294966784  ;;  %v102_v0 = vld [vmem:[#allocation9 + $0x18] sm:$0xff]  ;;  %v101_v2 = vld [vmem:[#allocation9 + $0x10] sm:$0xff]  ;;  %vm103_vm0 = vcmask 261120   ;;  %v188_v29 = vlaneseq  ;;  %v183_v30 = vstv %s555_s6  ;;  %vm192_vm1 = vcmask 1041409  }
  0x14   :  { %v96_v1 = vld [vmem:[#allocation8 + $0x18] sm:$0xff]  ;;  %122 = vmatpush.msra.mxu0 %v102_v0  ;;  %v95_v3 = vld [vmem:[#allocation8 + $0x10] sm:$0xff]  ;;  %296 = vmatpush.msra.mxu2 %v102_v0  ;;  %v100_v4 = vld [vmem:[#allocation9 + $0x8] sm:$0xff]  ;;  %vm195_vm2 = vcmask 58368   ;;  %v463_v39 = vmov 0   ;;  %s280_s26 = sshll.u32 %s556_s7, 4  ;;  %s281_s26 = int_to_ptr.hbm [resolvable:$true] %s280_s26 }
  0x15   :  { %151 = vmatpush.msra.mxu1 %v96_v1  ;;  %300 = vmatpush.msra.mxu3 %v96_v1  ;;  %v94_v5 = vld [vmem:[#allocation8 + $0x8] sm:$0xff]  ;;  %v99_v6 = vld [vmem:[#allocation9] sm:$0xff]  ;;  %v97_v8 = vld [vmem:[#allocation6] sm:$0xff]  ;;  %v532_v31 = vand.u32 127, %v188_v29 }
  0x16   :  { %123 = vmatpush.msra.mxu0 %v101_v2  ;;  %297 = vmatpush.msra.mxu2 %v101_v2  ;;  %v93_v7 = vld [vmem:[#allocation8] sm:$0xff]  ;;  %v98_v10 = vld [vmem:[#allocation6 + $0x8] sm:$0xff]  ;;  %v92_v11 = vld [vmem:[#allocation3 + $0x8] sm:$0xff] }
  0x17   :  { %152 = vmatpush.msra.mxu1 %v95_v3  ;;  %301 = vmatpush.msra.mxu3 %v95_v3  ;;  %v91_v9 = vld [vmem:[#allocation3] sm:$0xff] }
  0x18   :  { %124 = vmatpush.msra.mxu0 %v100_v4  ;;  %298 = vmatpush.msra.mxu2 %v100_v4  ;;  %v315_v12 = vld [vmem:[%s553_s4] ss:$0 sm:$0xff] }
  0x19   :  { %153 = vmatpush.msra.mxu1 %v94_v5  ;;  %302 = vmatpush.msra.mxu3 %v94_v5  ;;  %v316_v19 = vld [vmem:[%s554_s5] ss:$0 sm:$0xff]  ;;  %s464_s5 = smov [#allocation11]  }
  0x1a   :  { %125 = vmatpush.msra.mxu0 %v99_v6  ;;  %299 = vmatpush.msra.mxu2 %v99_v6  ;;  %s278_s6 = sshll.u32 %s464_s5, 4  ;;  %s279_s6 = int_to_ptr.vmem [resolvable:$true] %s278_s6 }
  0x1b   :  { %154 = vmatpush.msra.mxu1 %v93_v7  ;;  %292 = vmatmul.msk.f32.vlgmr.msra.gmra.mxu0 %vm103_vm0, %v97_v8 }
  0x1c   :  { %294 = vmatmul.msk.f32.vlgmr.msra.gmra.mxu1 %vm103_vm0, %v91_v9  ;;  %303 = vmatpush.msra.mxu3 %v93_v7 }
  0x1d   :  { %293 = vmatmul.msk.f32.vlgmr.msra.gmra.mxu2 %vm103_vm0, %v98_v10  ;;  %295 = vmatmul.msk.f32.vlgmr.msra.gmra.mxu3 %vm103_vm0, %v92_v11 }
  0x1e   :  { %313 = vset.pattern.permute.xlu2 %v463_v39  ;;  %312 = vset.pattern.permute.xlu1 %v463_v39 }
  0x1f   :  { %314 = vset.pattern.permute.xlu0 %v463_v39 }
  0x98   :  { %v127_v13 = vpop.f32.mrf.mxu0 }
  0x99   :  { %v156_v14 = vpop.f32.mrf.mxu1 }
  0x9a   :  { %v157_v15 = vadd.f32 %v156_v14, %v127_v13 }
  0x9c   :  { %v166_v16 = vadd.f32 %v315_v12, %v157_v15 }
  0x9e   :  { %317 = vtanh.f32 %v166_v16 }
  0xa0   :  { %v130_v17 = vpop.f32.mrf.mxu2  ;;  %v159_v18 = vpop.f32.mrf.mxu3 }
  0xa1   :  { %v160_v20 = vadd.f32 %v159_v18, %v130_v17 }
  0xa3   :  { %v167_v22 = vadd.f32 %v315_v12, %v160_v20 }
  0xa4   :  { %v318_v21 = vpop.eup %317 }
  0xa5   :  { %v174_v23 = vmul.f32 %v318_v21, %v316_v19  ;;  %319 = vtanh.f32 %v167_v22 }
  0xa7   :  { %v176_v24 = vsel %vm103_vm0, %v174_v23, 0.0 }
  0xa8   :  { %177 = vadd.xlane.f32.xlu0 %v176_v24 }
  0xab   :  { %v320_v25 = vpop.eup %319 }
  0xac   :  { %v175_v26 = vmul.f32 %v320_v25, %v316_v19 }
  0xae   :  { %v179_v27 = vsel %vm103_vm0, %v175_v26, 0.0 }
  0xb0   :  { %180 = vadd.xlane.f32.xlu0 %v179_v27 }
 0x11b   :  { %v178_v28 = vpop.xlane.xlu0 %177 }
 0x11c   :  { %v184_v32 = vadd.f32 %v183_v30, %v178_v28 }
 0x11e   :  { %v190_v35 = vperm.slane %v184_v32, %v532_v31 }
 0x123   :  { %v181_v33 = vpop.xlane.xlu0 %180 }
 0x124   :  { %v185_v34 = vadd.f32 %v183_v30, %v181_v33 }
 0x126   :  { %v191_v36 = vperm.slane %v185_v34, %v532_v31 }
 0x128   :  { %v193_v37 = vsel %vm192_vm1, %v191_v36, %v190_v35 }
 0x129   :  { %v196_v38 = vsel %vm195_vm2, %v193_v37, -inf }
 0x12a   :  { %197 = vmax.xlane.f32.xlu1 %v196_v38 }
 0x19d   :  { %v198_v40 = vpop.xlane.xlu1 %197 }
 0x19e   :  { %v200_v41 = vperm.slane %v198_v40, 0  ;;  %v201_v42 = vperm.slane %v198_v40, 1 }
 0x1a0   :  { %v204_v43 = vsub.f32 %v184_v32, %v200_v41  ;;  %v205_v44 = vsub.f32 %v185_v34, %v201_v42 }
 0x1a2   :  { %v206_v45 = vmul.f32 1.442695, %v204_v43  ;;  %v208_v46 = vmul.f32 1.442695, %v205_v44 }
 0x1a4   :  { %321 = vpow2.f32 %v206_v45 }
 0x1a5   :  { %323 = vpow2.f32 %v208_v46 }
 0x1aa   :  { %v322_v47 = vpop.eup %321 }
 0x1ab   :  { %v324_v48 = vpop.eup %323  ;;  %213 = vperm.xlu1 %312, %v322_v47  }
 0x1ac   :  { %216 = vperm.xlu2 %313, %v324_v48  }
 0x206   :  { %v217_v49 = vpop.permute.xlu2 %216 }
 0x207   :  { %v219_v51 = vperm.slane %v217_v49, %v532_v31 }
 0x21d   :  { %v214_v50 = vpop.permute.xlu1 %213 }
 0x21e   :  { %v218_v52 = vperm.slane %v214_v50, %v532_v31 }
 0x220   :  { %v220_v53 = vsel %vm192_vm1, %v219_v51, %v218_v52 }
 0x221   :  { %v222_v54 = vsel %vm195_vm2, %v220_v53, 0.0 }
 0x222   :  { %223 = vadd.xlane.f32.xlu2 %v222_v54 }
 0x295   :  { %v224_v55 = vpop.xlane.xlu2 %223 }
 0x296   :  { %v226_v56 = vperm.slane %v224_v55, 0  ;;  %v227_v57 = vperm.slane %v224_v55, 1 }
 0x298   :  { %325 = vrcp.f32 %v226_v56  ;;  %v241_v0 = vand.u32 2147483648, %v226_v56  ;;  %v256_v1 = vand.u32 2147483648, %v227_v57  ;;  %v239_v3 = vand.u32 2147483647, %v226_v56 }
 0x299   :  { %327 = vrcp.f32 %v227_v57  ;;  %v254_v5 = vand.u32 2147483647, %v227_v57  ;;  %vm235_vm5 = vweird.f32 %v226_v56  ;;  %vm250_vm6 = vweird.f32 %v227_v57 }
 0x29a   :  { %v242_v8 = vor.u32 1.1754944e-38, %v241_v0  ;;  %v257_v9 = vor.u32 1.1754944e-38, %v256_v1  ;;  %vm240_vm9 = vcmp.eq.f32.partialorder %v239_v3, 8.507059e+37 }
 0x29b   :  { %vm255_vm10 = vcmp.eq.f32.partialorder %v254_v5, 8.507059e+37 }
 0x29e   :  { %v326_v58 = vpop.eup %325 }
 0x29f   :  { %v328_v59 = vpop.eup %327  ;;  %v231_v60 = vmul.f32 %v326_v58, %v226_v56  ;;  %vm236_vm3 = vweird.f32 %v326_v58 }
 0x2a0   :  { %v246_v61 = vmul.f32 %v328_v59, %v227_v57  ;;  %vm251_vm4 = vweird.f32 %v328_v59  ;;  %vm237_vm7 = vmor %vm235_vm5, %vm236_vm3 }
 0x2a1   :  { %v232_v62 = vsub.f32 1.0, %v231_v60  ;;  %vm252_vm8 = vmor %vm250_vm6, %vm251_vm4 }
 0x2a2   :  { %v247_v63 = vsub.f32 1.0, %v246_v61 }
 0x2a3   :  { %v233_v2 = vmul.f32 %v326_v58, %v232_v62 }
 0x2a4   :  { %v248_v4 = vmul.f32 %v328_v59, %v247_v63 }
 0x2a5   :  { %v234_v6 = vadd.f32 %v326_v58, %v233_v2 }
 0x2a6   :  { %v249_v7 = vadd.f32 %v328_v59, %v248_v4 }
 0x2a7   :  { %v238_v10 = vsel %vm237_vm7, %v326_v58, %v234_v6 }
 0x2a8   :  { %v253_v11 = vsel %vm252_vm8, %v328_v59, %v249_v7  ;;  %v243_v12 = vsel %vm240_vm9, %v242_v8, %v238_v10 }
 0x2a9   :  { %v258_v13 = vsel %vm255_vm10, %v257_v9, %v253_v11  ;;  %v244_v14 = vmul.f32 %v322_v47, %v243_v12 }
 0x2aa   :  { %v259_v15 = vmul.f32 %v324_v48, %v258_v13 }
 0x2ab   :  { %263 = vperm.xlu0 %314, %v244_v14  }
 0x2ac   :  { %266 = vperm.xlu1 %312, %v259_v15  }
 0x31d   :  { %v264_v16 = vpop.permute.xlu0 %263 }
 0x31e   :  { %v267_v17 = vpop.permute.xlu1 %266  ;;  %v268_v18 = vperm.slane %v264_v16, %v532_v31 }
 0x31f   :  { %v269_v19 = vperm.slane %v267_v17, %v532_v31 }
 0x321   :  { %v270_v20 = vsel %vm192_vm1, %v269_v19, %v268_v18 }
 0x322   :  { %272 = vst.msk [vmem:[#allocation11] sm:$0x3] %vm195_vm2, %v270_v20 }
 0x323   :  { %283 = dma.vmem_to_hbm [thread:$0]  %s279_s6, 32, %s281_s26, [#allocation5]  }
 0x324   :  { %455 = dma.done.wait [#allocation5], 32  }
 0x325   :  { %456 = vsyncadd [#allocation5], 4294967264 }
 0x326   :  { %288 = vsyncpa [#allocation4], 1 }
 0x327   :  { %289 = vsyncpa [#allocation7], 1 }
 0x328   :  { %290 = vsyncpa [#allocation10], 1 }
 0x329   :  { %291 = vsyncpa [#allocation5], 1 }

</bundles_post_ra>
